<compile_context>
chip_gen: v5e
topology: v5e:2x2
jax: 0.10.0
libtpu: 0.0.40
codegen_flags: <defaults>
</compile_context>

<pallas_src>
from collections import namedtuple

import jax
import jax.numpy as jnp
from jax.experimental import pallas as pl
from jax.experimental.pallas import tpu as pltpu


PersistenceInformation = namedtuple("PersistenceInformation", ["pairing", "dimension"])

_VPU_MAX_D = 4          # diff-square costs ~3*D VALU ops/elem vs ~4 for the MXU path
_XLA_FALLBACK_MAX_N = 256


# ----------------------------------------------------------------------------
# Kernels: per-tile MAX of squared pairwise Euclidean distances (no N^2 store)
# ----------------------------------------------------------------------------
def _tile_max_common(max_ref, sq_fn, tm, tn):
    i = pl.program_id(1)
    j = pl.program_id(2)
    # Skip tiles that lie entirely in the strict lower triangle: the matrix is
    # symmetric, so every skipped entry's mirror lives in a computed tile.
    skip = (j + 1) * tn <= i * tm

    @pl.when(jnp.logical_not(skip))
    def _():
        tile_max = jnp.max(sq_fn())
        max_ref[...] = jnp.full(max_ref.shape, tile_max, dtype=jnp.float32)

    @pl.when(skip)
    def _():
        # 0 <= any squared distance, so zero-filled skipped tiles never win the max.
        max_ref[...] = jnp.zeros(max_ref.shape, jnp.float32)


def _max_kernel_vpu(x_ref, yt_ref, max_ref):
    # x_ref : (1, tm, D) row tile;  yt_ref : (1, D, tn) column tile (pre-transposed)
    tm, D = x_ref.shape[1], x_ref.shape[2]
    tn = yt_ref.shape[2]

    def sq_fn():
        x = x_ref[0]                      # (tm, D)
        yt = yt_ref[0]                    # (D, tn)
        sq = jnp.zeros((tm, tn), jnp.float32)
        for d in range(D):                # D <= 4, static -> unrolled
            diff = x[:, d:d + 1] - yt[d:d + 1, :]
            sq = sq + diff * diff
        return sq

    _tile_max_common(max_ref, sq_fn, tm, tn)


def _max_kernel_mxu(x_ref, yt_ref, xx_ref, yy_ref, max_ref):
    # xx_ref : (1, tm, 1) and yy_ref : (1, 1, tn) are hoisted to the wrapper.
    tm = x_ref.shape[1]
    tn = yt_ref.shape[2]

    def sq_fn():
        x = x_ref[0]                      # (tm, D)
        yt = yt_ref[0]                    # (D, tn)
        xy = jax.lax.dot_general(x, yt, (((1,), (0,)), ((), ())),
                                 precision=jax.lax.Precision.HIGHEST,
                                 preferred_element_type=jnp.float32)
        return jnp.maximum(xx_ref[0] + yy_ref[0] - 2.0 * xy, 0.0)

    _tile_max_common(max_ref, sq_fn, tm, tn)


# ----------------------------------------------------------------------------
# Wrapper: (B, N, D) -> (B,) max squared pairwise distance
# ----------------------------------------------------------------------------
def _vmem_budget_bytes():
    cap = 64 * 1024 * 1024          # v7x has the smallest physical VMEM (64 MiB)
    try:
        cap = int(getattr(pltpu.get_tpu_info(), "vmem_capacity_bytes", cap))
    except Exception:
        pass
    return min(int(cap * 0.6), 96 * 1024 * 1024)


def _pick_tiles(Npad, D, budget_bytes):
    """Largest (tm, tn) dividing Npad that fits the VMEM budget (double-buffered
    blocks + the in-kernel (tm, tn) squared-distance intermediate + slack)."""
    def cost(tm, tn):
        per_block = (tm * D + D * tn + tm + tn + 8 * 128) * 4
        return 2 * per_block + tm * tn * 4 + (2 << 20)

    tm_opts = [c for c in (256, 128, 64, 32, 16, 8) if Npad % c == 0]
    tn_opts = [c for c in (1024, 512, 256, 128) if Npad % c == 0]
    for tn in tn_opts:
        for tm in tm_opts:
            if cost(tm, tn) <= budget_bytes:
                return tm, tn
    return tm_opts[-1], tn_opts[-1]


def max_pairwise_sqdist(points):
    """points: (B, N, D) -> (B,) max squared pairwise Euclidean distance per cloud."""
    B, N, D = points.shape
    pts = points.astype(jnp.float32)

    if N <= _XLA_FALLBACK_MAX_N:
        # Tiny clouds: lane padding + pallas launch/pipeline overhead costs more
        # than a fused XLA cdist, and a 1-step grid would idle one v7x core.
        diff = pts[:, :, None, :] - pts[:, None, :, :]
        return jnp.max(jnp.sum(diff * diff, axis=-1), axis=(1, 2))

    Npad = ((N + 127) // 128) * 128
    if Npad != N:
        # Pad by replicating point 0: leaves the per-cloud maximum unchanged.
        pad = jnp.broadcast_to(pts[:, :1, :], (B, Npad - N, D))
        pts = jnp.concatenate([pts, pad], axis=1)

    budget = _vmem_budget_bytes()
    tm, tn = _pick_tiles(Npad, D, budget)
    rows, cols = Npad // tm, Npad // tn

    pts_t = jnp.swapaxes(pts, 1, 2)                    # (B, D, Npad), once, in XLA

    x_spec = pl.BlockSpec((1, tm, D), lambda b, i, j: (b, i, 0))
    yt_spec = pl.BlockSpec((1, D, tn), lambda b, i, j: (b, 0, j))
    out_spec = pl.BlockSpec((1, 8, 128), lambda b, i, j: (b, i, j))
    out_shape = jax.ShapeDtypeStruct((B, rows * 8, cols * 128), jnp.float32)

    if D <= _VPU_MAX_D:
        kernel = _max_kernel_vpu
        inputs = (pts, pts_t)
        in_specs = [x_spec, yt_spec]
    else:
        xx = jnp.sum(pts * pts, axis=2, keepdims=True)  # (B, Npad, 1), hoisted
        yy = jnp.swapaxes(xx, 1, 2)                     # (B, 1, Npad), hoisted
        kernel = _max_kernel_mxu
        inputs = (pts, pts_t, xx, yy)
        in_specs = [x_spec, yt_spec,
                    pl.BlockSpec((1, tm, 1), lambda b, i, j: (b, i, 0)),
                    pl.BlockSpec((1, 1, tn), lambda b, i, j: (b, 0, j))]

    pmax = pl.pallas_call(
        kernel,
        out_shape=out_shape,
        grid_spec=pltpu.PrefetchScalarGridSpec(
            num_scalar_prefetch=0,
            grid=(B, rows, cols),
            in_specs=in_specs,
            out_specs=out_spec),
        compiler_params=pltpu.CompilerParams(
            dimension_semantics=("parallel", "parallel", "parallel"),
            vmem_limit_bytes=budget),
    )(*inputs)

    return jnp.max(pmax, axis=(1, 2))


def _l2_norm(v):
    v = v.astype(jnp.float32)
    return jnp.sqrt(jnp.sum(v * v))


# ----------------------------------------------------------------------------
# SignatureLoss (forward-pass semantics of the PyTorch module)
# ----------------------------------------------------------------------------
class SignatureLossPallas:
    def __init__(self, p=2, normalise=True, dimensions=0, weights=None):
        assert p == 2, "only Euclidean (p=2) supported"  # see TODO(synk)
        self.p = p
        self.normalise = normalise
        self.dimensions = [dimensions] if isinstance(dimensions, int) else list(dimensions)
        if weights is None:
            w = jnp.ones((len(self.dimensions),), jnp.float32)
        else:
            w = jnp.asarray(list(weights), jnp.float32)
        self.weights = w / jnp.sum(w)

    @staticmethod
    def _select_distances(pc, generators):
        # Gathered cdist entries recomputed directly from the points (exact,
        # O(P*D) with P ~ dozens) -- the N^2 matrix is never materialised.
        def pair_dist(ri, ci):
            diff = pc[ri] - pc[ci]
            return jnp.sqrt(jnp.sum(diff * diff, axis=-1))

        if generators.shape[1] == 3:
            return pair_dist(generators[:, 1], generators[:, 2])
        creator = pair_dist(generators[:, 0], generators[:, 1])
        destroyer = pair_dist(generators[:, 2], generators[:, 3])
        return jnp.abs(destroyer - creator)

    @staticmethod
    def _align(sig1, sig2):
        m = min(sig1.shape[0], sig2.shape[0])
        return sig1[:m], sig2[:m]

    def __call__(self, X, Y):
        X_pc, X_pi = X
        Y_pc, Y_pi = Y
        X_pc = jnp.asarray(X_pc, jnp.float32)
        Y_pc = jnp.asarray(Y_pc, jnp.float32)

        if self.normalise:
            if X_pc.shape == Y_pc.shape:
                # one batched pallas_call for both clouds
                msq = max_pairwise_sqdist(jnp.stack([X_pc, Y_pc], axis=0))
                X_scale = jax.lax.rsqrt(msq[0])
                Y_scale = jax.lax.rsqrt(msq[1])
            else:
                X_scale = jax.lax.rsqrt(max_pairwise_sqdist(X_pc[None, ...])[0])
                Y_scale = jax.lax.rsqrt(max_pairwise_sqdist(Y_pc[None, ...])[0])
        else:
            X_scale = jnp.float32(1.0)
            Y_scale = jnp.float32(1.0)

        total = jnp.float32(0.0)
        for dim, weight in zip(self.dimensions, self.weights):
            X_gen = X_pi[dim].pairing
            Y_gen = Y_pi[dim].pairing

            X_sig_X = X_scale * self._select_distances(X_pc, X_gen)
            X_sig_Y = X_scale * self._select_distances(X_pc, Y_gen)
            Y_sig_X = Y_scale * self._select_distances(Y_pc, X_gen)
            Y_sig_Y = Y_scale * self._select_distances(Y_pc, Y_gen)

            X_sig_X, X_sig_Y = self._align(X_sig_X, X_sig_Y)
            Y_sig_Y, Y_sig_X = self._align(Y_sig_Y, Y_sig_X)

            total = total + weight * 0.5 * _l2_norm(X_sig_X - X_sig_Y)
            total = total + weight * 0.5 * _l2_norm(Y_sig_Y - Y_sig_X)
        return total


# ----------------------------------------------------------------------------
# Pure-JAX reference (full cdist, no Pallas) for a sanity check
# ----------------------------------------------------------------------------
def _reference_loss(X, Y, dimensions, weights, normalise=True):
    def cdist(pc):
        diff = pc[:, None, :] - pc[None, :, :]
        return jnp.sqrt(jnp.sum(diff * diff, axis=-1))

    def select(dist, gen):
        if gen.shape[1] == 3:
            return dist[gen[:, 1], gen[:, 2]]
        return jnp.abs(dist[gen[:, 2], gen[:, 3]] - dist[gen[:, 0], gen[:, 1]])

    X_pc, X_pi = X
    Y_pc, Y_pi = Y
    Xd, Yd = cdist(X_pc), cdist(Y_pc)
    if normalise:
        Xd = Xd / jnp.max(Xd)
        Yd = Yd / jnp.max(Yd)
    total = 0.0
    for dim, w in zip(dimensions, weights):
        xsx, xsy = select(Xd, X_pi[dim].pairing), select(Xd, Y_pi[dim].pairing)
        ysx, ysy = select(Yd, X_pi[dim].pairing), select(Yd, Y_pi[dim].pairing)
        m1 = min(xsx.shape[0], xsy.shape[0])
        m2 = min(ysy.shape[0], ysx.shape[0])
        total = total + w * 0.5 * jnp.linalg.norm(xsx[:m1] - xsy[:m1])
        total = total + w * 0.5 * jnp.linalg.norm(ysy[:m2] - ysx[:m2])
    return total


if __name__ == "__main__":
    key = jax.random.PRNGKey(0)
    k_xpc, k_ypc, k_x0, k_x1, k_y0, k_y1 = jax.random.split(key, 6)

    # N > 256 so the Pallas path (not the tiny-N XLA fallback) runs, with a
    # multi-tile grid of (2 clouds, 3 row tiles, 3 col tiles); D=8 exercises
    # the MXU (HIGHEST precision) branch.
    N, D = 384, 8

    X_pc = jax.random.normal(k_xpc, (N, D), jnp.float32)
    Y_pc = jax.random.normal(k_ypc, (N, D), jnp.float32)

    # Deterministic synthetic persistence pairings (normally from a PH library).
    X_pi = [
        PersistenceInformation(jax.random.randint(k_x0, (16, 3), 0, N, jnp.int32), 0),
        PersistenceInformation(jax.random.randint(k_x1, (10, 4), 0, N, jnp.int32), 1),
    ]
    Y_pi = [
        PersistenceInformation(jax.random.randint(k_y0, (12, 3), 0, N, jnp.int32), 0),
        PersistenceInformation(jax.random.randint(k_y1, (14, 4), 0, N, jnp.int32), 1),
    ]

    loss_mod = SignatureLossPallas(p=2, normalise=True, dimensions=(0, 1),
                                   weights=[1.0, 2.0])

    loss = loss_mod((X_pc, X_pi), (Y_pc, Y_pi))
    loss = jax.block_until_ready(loss)

    ref = _reference_loss((X_pc, X_pi), (Y_pc, Y_pi),
                          loss_mod.dimensions, loss_mod.weights, normalise=True)
    ref = jax.block_until_ready(ref)

    err = abs(float(loss) - float(ref))
    assert err <= 1e-3 * max(1.0, abs(float(ref))), (float(loss), float(ref))

    print("KERNEL_OK")
</pallas_src>

<mosaic_0001>
module attributes {stable_mosaic.version = 11 : i64} {
  func.func @_max_kernel_mxu(%arg0: i32, %arg1: i32, %arg2: i32, %arg3: memref<1x128x8xf32, #tpu.memory_space<vmem>>, %arg4: memref<1x8x128xf32, #tpu.memory_space<vmem>>, %arg5: memref<1x128x1xf32, #tpu.memory_space<vmem>>, %arg6: memref<1x1x128xf32, #tpu.memory_space<vmem>>, %arg7: memref<1x8x128xf32, #tpu.memory_space<vmem>>) attributes {dimension_semantics = [#tpu.dimension_semantics<parallel>, #tpu.dimension_semantics<parallel>, #tpu.dimension_semantics<parallel>], iteration_bounds = array<i64: 2, 3, 3>, scalar_prefetch = 0 : i64, scratch_operands = 0 : i64, tpu.core_type = #tpu.core_type<tc>, window_params = [{transform_indices = @transform_0, window_bounds = array<i64: 1, 128, 8>}, {transform_indices = @transform_1, window_bounds = array<i64: 1, 8, 128>}, {transform_indices = @transform_2, window_bounds = array<i64: 1, 128, 1>}, {transform_indices = @transform_3, window_bounds = array<i64: 1, 1, 128>}, {transform_indices = @transform_4, window_bounds = array<i64: 1, 8, 128>}]} {
    %c1_i32 = arith.constant 1 : i32
    %0 = arith.addi %arg2, %c1_i32 : i32
    %c128_i32 = arith.constant 128 : i32
    %1 = arith.muli %0, %c128_i32 : i32
    %c128_i32_0 = arith.constant 128 : i32
    %2 = arith.muli %arg1, %c128_i32_0 : i32
    %3 = arith.cmpi sle, %1, %2 : i32
    %true = arith.constant true
    %4 = arith.xori %3, %true : i1
    %5 = arith.extui %4 : i1 to i32
    %c0_i32 = arith.constant 0 : i32
    %6 = arith.cmpi ne, %5, %c0_i32 : i32
    scf.if %6 {
      %c0 = arith.constant 0 : index
      %c0_2 = arith.constant 0 : index
      %c0_3 = arith.constant 0 : index
      %9 = vector.load %arg3[%c0, %c0_2, %c0_3] : memref<1x128x8xf32, #tpu.memory_space<vmem>>, vector<1x128x8xf32>
      %10 = vector.shape_cast %9 : vector<1x128x8xf32> to vector<128x8xf32>
      %c0_4 = arith.constant 0 : index
      %c0_5 = arith.constant 0 : index
      %c0_6 = arith.constant 0 : index
      %11 = vector.load %arg4[%c0_4, %c0_5, %c0_6] : memref<1x8x128xf32, #tpu.memory_space<vmem>>, vector<1x8x128xf32>
      %12 = vector.shape_cast %11 : vector<1x8x128xf32> to vector<8x128xf32>
      %cst = arith.constant dense<0.000000e+00> : vector<128x128xf32>
      %13 = tpu.matmul %10, %12, %cst {dimension_numbers = #tpu.dot_dimension_numbers<[1], [0], [0], [1], [0, 0, 1, 1], [], []>, precision = #tpu.contract_precision<fp32>} : vector<128x8xf32>, vector<8x128xf32>, vector<128x128xf32> -> vector<128x128xf32>
      %c0_7 = arith.constant 0 : index
      %c0_8 = arith.constant 0 : index
      %c0_9 = arith.constant 0 : index
      %14 = vector.load %arg5[%c0_7, %c0_8, %c0_9] : memref<1x128x1xf32, #tpu.memory_space<vmem>>, vector<1x128x1xf32>
      %15 = vector.shape_cast %14 : vector<1x128x1xf32> to vector<128x1xf32>
      %c0_10 = arith.constant 0 : index
      %c0_11 = arith.constant 0 : index
      %c0_12 = arith.constant 0 : index
      %16 = vector.load %arg6[%c0_10, %c0_11, %c0_12] : memref<1x1x128xf32, #tpu.memory_space<vmem>>, vector<1x1x128xf32>
      %17 = vector.shape_cast %16 : vector<1x1x128xf32> to vector<1x128xf32>
      %18 = vector.broadcast %15 : vector<128x1xf32> to vector<128x128xf32>
      %19 = vector.broadcast %17 : vector<1x128xf32> to vector<128x128xf32>
      %20 = arith.addf %18, %19 : vector<128x128xf32>
      %cst_13 = arith.constant 2.000000e+00 : f32
      %21 = vector.broadcast %cst_13 : f32 to vector<128x128xf32>
      %22 = arith.mulf %21, %13 : vector<128x128xf32>
      %23 = arith.subf %20, %22 : vector<128x128xf32>
      %cst_14 = arith.constant 0.000000e+00 : f32
      %24 = vector.broadcast %cst_14 : f32 to vector<128x128xf32>
      %25 = arith.maximumf %23, %24 : vector<128x128xf32>
      %26 = vector.shape_cast %25 : vector<128x128xf32> to vector<1x128x128xf32>
      %cst_15 = arith.constant dense<0xFF800000> : vector<1xf32>
      %27 = vector.multi_reduction <maximumf>, %26, %cst_15 [1, 2] : vector<1x128x128xf32> to vector<1xf32>
      %28 = vector.shape_cast %27 : vector<1xf32> to vector<1x1x1xf32>
      %29 = vector.extract %28[0, 0, 0] : f32 from vector<1x1x1xf32>
      %30 = vector.broadcast %29 : f32 to vector<1x8x128xf32>
      %c0_16 = arith.constant 0 : index
      %c0_17 = arith.constant 0 : index
      %c0_18 = arith.constant 0 : index
      %31 = vector.load %arg7[%c0_16, %c0_17, %c0_18] : memref<1x8x128xf32, #tpu.memory_space<vmem>>, vector<1x8x128xf32>
      tpu.vector_store %arg7[%c0_16, %c0_17, %c0_18], %30 {strides = array<i32>} : memref<1x8x128xf32, #tpu.memory_space<vmem>>, vector<1x8x128xf32>,
    } else {
    }
    %7 = arith.extui %3 : i1 to i32
    %c0_i32_1 = arith.constant 0 : i32
    %8 = arith.cmpi ne, %7, %c0_i32_1 : i32
    scf.if %8 {
      %cst = arith.constant 0.000000e+00 : f32
      %9 = vector.broadcast %cst : f32 to vector<1x8x128xf32>
      %c0 = arith.constant 0 : index
      %c0_2 = arith.constant 0 : index
      %c0_3 = arith.constant 0 : index
      %10 = vector.load %arg7[%c0, %c0_2, %c0_3] : memref<1x8x128xf32, #tpu.memory_space<vmem>>, vector<1x8x128xf32>
      tpu.vector_store %arg7[%c0, %c0_2, %c0_3], %9 {strides = array<i32>} : memref<1x8x128xf32, #tpu.memory_space<vmem>>, vector<1x8x128xf32>,
    } else {
    }
    return
  }
  func.func @transform_0(%arg0: i32, %arg1: i32, %arg2: i32) -> (i32, i32, i32) {
    %c0_i32 = arith.constant 0 : i32
    %c0_i32_0 = arith.constant 0 : i32
    return %arg0, %arg1, %c0_i32 : i32, i32, i32
  }
  func.func @transform_1(%arg0: i32, %arg1: i32, %arg2: i32) -> (i32, i32, i32) {
    %c0_i32 = arith.constant 0 : i32
    %c0_i32_0 = arith.constant 0 : i32
    return %arg0, %c0_i32, %arg2 : i32, i32, i32
  }
  func.func @transform_2(%arg0: i32, %arg1: i32, %arg2: i32) -> (i32, i32, i32) {
    %c0_i32 = arith.constant 0 : i32
    %c0_i32_0 = arith.constant 0 : i32
    return %arg0, %arg1, %c0_i32 : i32, i32, i32
  }
  func.func @transform_3(%arg0: i32, %arg1: i32, %arg2: i32) -> (i32, i32, i32) {
    %c0_i32 = arith.constant 0 : i32
    %c0_i32_0 = arith.constant 0 : i32
    return %arg0, %c0_i32, %arg2 : i32, i32, i32
  }
  func.func @transform_4(%arg0: i32, %arg1: i32, %arg2: i32) -> (i32, i32, i32) {
    %c0_i32 = arith.constant 0 : i32
    return %arg0, %arg1, %arg2 : i32, i32, i32
  }
}

</mosaic_0001>

<bundles_post_ra>
// kernel: tpu_custom_call.1
= control target key start
LH: loop header
LB: loop body
LE: loop exit
PB: predicated region body
PF: predicated region fallthrough
CT: control target
= control target key end

     0   :  { %9 = vsyncpa [#allocation3], 0  ;;  %s2188_s0 = inlined_call_operand.vmem [shape: f32[2,384,8], index: 0, kind: input, shape index: {}]   ;;  %s2189_s1 = inlined_call_operand.vmem [shape: f32[2,8,384], index: 1, kind: input, shape index: {}]   ;;  %s2190_s2 = inlined_call_operand.vmem [shape: f32[2,384,1], index: 2, kind: input, shape index: {}]   ;;  %s2191_s3 = inlined_call_operand.vmem [shape: f32[2,1,384], index: 3, kind: input, shape index: {}]   ;;  %s2192_s4 = inlined_call_operand.hbm [shape: f32[2,24,384], index: 4, kind: output, shape index: {}]  }
   0x1   :  { %11 = vsyncpa [#allocation3 + $0x1], 0  ;;  %s1627_s15 = smov 0   ;;  %s1629_s16 = smov 0  }
   0x2   :  { %s1631_s17 = smov 0   ;;  %s1633_s18 = smov 0  }
   0x3   :  { %s1635_s19 = smov 0   ;;  %s1637_s20 = smov 0  }
   0x4   :  { %s1639_s21 = smov 0   ;;  %s1641_s22 = smov 0  }
   0x5   :  { %s1643_s23 = smov 0   ;;  %s1645_s24 = smov 0  }
   0x6 LB: > { %2201 = sst [smem:[#allocation5_spill]] %s1570_s17  ;;  %s1366_s25 = sadd.s32 4294967295, %s1598_s24   ;;  %s1598_s24 = sphi %s1645_s24, %s17_s24   ;;  %s1594_s23 = sphi %s1643_s23, %s2221_s23   ;;  %s1590_s22 = sphi %s1641_s22, %s2220_s22   ;;  %s1586_s21 = sphi %s1639_s21, %s2219_s21   ;;  %s1582_s20 = sphi %s1637_s20, %s2218_s20   ;;  %s1578_s19 = sphi %s1635_s19, %s2217_s19   ;;  %s1574_s18 = sphi %s1633_s18, %s2216_s18   ;;  %s1570_s17 = sphi %s1631_s17, %s2215_s17   ;;  %s1566_s16 = sphi %s1629_s16, %s2223_s16   ;;  %s1562_s15 = sphi %s1627_s15, %s2222_s15  }
   0x7   : > { %2202 = sst [smem:[#allocation6_spill]] %s1586_s21  ;;  %s29_s26 = sadd.s32 1, %s1586_s21 }
   0x8   : > { %2203 = sst [smem:[#allocation7_spill]] %s1590_s22  ;;  %p30_p0 = scmp.ge.s32.totalorder %s29_s26, 3 }
   0x9   : > { %2204 = sst [smem:[#allocation8_spill]] %s1594_s23  ;;  %s32_s27 = sadd.s32 1, %s1590_s22 }
   0xa   : > { %s1367_s28 = sadd.s32 4294967294, %s1598_s24   ;;  %p169_p1 = scmp.ne.s32.totalorder %s1570_s17, %s1566_s16 }
   0xb   : > { %s2225_s26 = smov (%p30_p0, %s29_s26), 0  ;;  %s2227_s27 = smov (!%p30_p0, %s32_s27), %s1590_s22 }
   0xc   : > { %2205 = sst [smem:[#allocation9_spill]] %s2225_s26  ;;  %s36_s29 = sadd.s32 1, %s1594_s23 }
   0xd   : > { %p170_p2 = scmp.eq.s32.totalorder %s1366_s25, 17  ;;  %p34_p3 = scmp.ge.s32.totalorder %s2227_s27, 3 }
   0xe   : > { %p175_p4 = scmp.ne.s32.totalorder %s1566_s16, %s1562_s15  ;;  %p176_p6 = scmp.eq.s32.totalorder %s1367_s28, 17 }
   0xf   : > { %p1689_p5 = por %p170_p2, %p169_p1  ;;  %s2229_s27 = smov (%p34_p3, %s2227_s27), 0 }
  0x10   : > { %2207 = sst [smem:[#allocation10_spill]] %s2229_s27  ;;  %s2231_s29 = smov (!%p34_p3, %s36_s29), %s1594_s23 }
  0x11   : > { %p1696_p7 = por %p176_p6, %p175_p4  ;;  %p38_p8 = scmp.ge.s32.totalorder %s2231_s29, 2 }
  0x12   : > { %p1370_p9 = scmp.ge.s32.totalorder %s1598_s24, 1  ;;  %s153_s6 = ssub.s32 %s1590_s22, %s2229_s27 }
  0x13   : > { %p241_p10 = scmp.lt.s32.totalorder %s1598_s24, 19  ;;  %s2233_s29 = smov (%p38_p8, %s2231_s29), 0 }
  0x14   : > { %2209 = sst [smem:[#allocation11_spill]] %s2233_s29  ;;  %s155_s7 = ssub.s32 %s1586_s21, %s2225_s26 }
  0x15   : > { %p242_p11 = pnand %p1370_p9, %p241_p10  ;;  %s152_s8 = ssub.s32 %s1594_s23, %s2233_s29 }
  0x16   : > { %s154_s9 = sor.u32 %s153_s6, %s152_s8  ;;  %s159_s11 = sadd.s32 1, %s1570_s17 }
  0x17   : > { %s156_s10 = sor.u32 %s155_s7, %s154_s9  ;;  %s2198_s13 = sand.u32 (!%p242_p11), 1, %s1566_s16  }
  0x18   : > { %p157_p12 = scmp.eq.s32.totalorder %s156_s10, 0  ;;  %245 = sbr.rel (%p242_p11) target bundleno = 600 (0x258), region = 36 }
  0x19   : > { %s1372_s14 = sshll.u32 (!%p242_p11), %s1578_s19, 4  ;;  %s1371_s25 = sshll.u32 (!%p242_p11), %s2198_s13, 3 }
  0x1a   : > { %s1712_s12 = scalar_select %p157_p12, %s1570_s17, %s159_s11  }
  0x1b   : > { %p296_p13 = scmp.lt.s32.totalorder (!%p242_p11), %s1582_s20, 1  ;;  %p298_p0 = scmp.lt.s32.totalorder (!%p242_p11), %s1372_s14, 47 }
  0x1c   : > { %2210 = sst [smem:[#allocation12_spill]] %s1712_s12  ;;  %p307_p1 = scmp.lt.s32.totalorder (!%p242_p11), %s1574_s18, 2 }
  0x1d   : > { %s297_s28 = scalar_select %p296_p13, %s1582_s20, 1 }
  0x1e   : > { %s2235_s14 = smov (!%p298_p0, %s1372_s14), 47  ;;  %s1385_s8 = sshll.u32 %s1574_s18, 7 }
  0x1f   : > { %s1389_s6 = smul.u32 48, %s297_s28  ;;  %s1722_s10 = sadd.s32 128, %s1385_s8 }
  0x20   : > { %s1390_s7 = smul.u32 3, %s297_s28  ;;  %s1746_s27 = scalar_lea.vmem [#allocation2], %s1371_s25 }
  0x21   : > { %s301_s9 = sadd.s32 %s1389_s6, %s2235_s14  ;;  %s2211_s22 = sshll.u32 %s1578_s19, 7 }
  0x22   : > { %s1373_s11 = sshll.u32 %s301_s9, 3  ;;  %p1379_p2 = scmp.le.s32.totalorder %s1722_s10, %s2211_s22 }
  0x23   : > { %s1728_s23 = scalar_lea.vmem %s2188_s0, %s1373_s11  ;;  %s1733_s21 = scalar_lea.vmem %s2190_s2, %s1373_s11 }
  0x24   : > { %s308_s12 = scalar_select %p307_p1, %s1574_s18, 2 }
  0x25   : > { %337 = sbr.rel (%p1379_p2) target bundleno = 571 (0x23b), region = 40 }
  0x26   : > { %s1736_s17 = sadd.s32 %s1390_s7, %s308_s12 }
  0x27   : > { %s1374_s14 = sshll.u32 %s1736_s17, 3  ;;  %s329_s8 = scalar_lea.vmem %s2191_s3, %s1736_s17 }
  0x28   : > { %s312_s26 = scalar_lea.vmem %s2189_s1, %s1374_s14 }
  0x2a   : > { %v354_v0 = vld [vmem:[%s312_s26] sm:$0xff]  ;;  %vm355_vm0 = vcmask 64512   ;;  %v347_v2 = vld [vmem:[%s1728_s23 + $0x48] sm:$0xff]  ;;  %v348_v11 = vld [vmem:[%s1728_s23 + $0x50] sm:$0xff] }
  0x2b   : > { %v346_v1 = vld [vmem:[%s1728_s23 + $0x40] sm:$0xff]  ;;  %v419_v3 = vand.u32 4294901760, %v354_v0  ;;  %v384_v5 = vsel %vm355_vm0, %v347_v2, 0  ;;  %v339_v7 = vld [vmem:[%s1728_s23 + $0x8] sm:$0xff]  ;;  %v340_v15 = vld [vmem:[%s1728_s23 + $0x10] sm:$0xff]  ;;  %v387_v21 = vsel %vm355_vm0, %v348_v11, 0 }
  0x2c   : > { %v381_v4 = vsel %vm355_vm0, %v346_v1, 0  ;;  %v338_v6 = vld [vmem:[%s1728_s23] sm:$0xff]  ;;  %v1759_v9 = vand.u32 4294901760, %v384_v5  ;;  %v360_v14 = vsel %vm355_vm0, %v339_v7, 0  ;;  %v363_v24 = vsel %vm355_vm0, %v340_v15, 0  ;;  %v349_v35 = vld [vmem:[%s1728_s23 + $0x58] sm:$0xff] }
  0x2d   : > { %v1757_v8 = vand.u32 4294901760, %v381_v4  ;;  %v357_v10 = vsel %vm355_vm0, %v338_v6, 0  ;;  %1387 = vmatpush.msra.mxu2 %v419_v3  ;;  %v566_v12 = vsub.f32 %v354_v0, %v419_v3  ;;  %420 = vmatpush.msra.mxu0 %v419_v3  ;;  %v1773_v18 = vand.u32 4294901760, %v360_v14  ;;  %v341_v37 = vld [vmem:[%s1728_s23 + $0x18] sm:$0xff]  ;;  %v350_v50 = vld [vmem:[%s1728_s23 + $0x60] sm:$0xff]  ;;  %v351_v0 = vld [vmem:[%s1728_s23 + $0x68] sm:$0xff] }
  0x2e   : > { %v1763_v13 = vand.u32 4294901760, %v357_v10  ;;  %v1771_v17 = vsub.f32 %v384_v5, %v1759_v9  ;;  %v1789_v29 = vand.u32 4294901760, %v387_v21  ;;  %v1795_v33 = vand.u32 4294901760, %v363_v24  ;;  %v342_v51 = vld [vmem:[%s1728_s23 + $0x20] sm:$0xff]  ;;  %v343_v1 = vld [vmem:[%s1728_s23 + $0x28] sm:$0xff] }
  0x2f   : > { %v1768_v16 = vsub.f32 %v381_v4, %v1757_v8  ;;  %v567_v19 = vand.u32 4294901760, %v566_v12  ;;  %653 = vmatpush.msrb.mxu2 %v566_v12  ;;  %v1781_v23 = vsub.f32 %v360_v14, %v1773_v18  ;;  %v390_v41 = vsel %vm355_vm0, %v349_v35, 0 }
  0x30   : > { %v1776_v20 = vsub.f32 %v357_v10, %v1763_v13  ;;  %v495_v28 = vand.u32 4294901760, %v1771_v17  ;;  %v1804_v39 = vsub.f32 %v387_v21, %v1789_v29  ;;  %v1811_v42 = vsub.f32 %v363_v24, %v1795_v33  ;;  %v352_v21 = vld [vmem:[%s1728_s23 + $0x70] sm:$0xff] }
  0x31   : > { %v487_v22 = vand.u32 4294901760, %v1768_v16  ;;  %v568_v25 = vsub.f32 %v566_v12, %v567_v19  ;;  %867 = vmatpush.msrb.mxu0 %v567_v19  ;;  %v431_v32 = vand.u32 4294901760, %v1781_v23  ;;  %v366_v43 = vsel %vm355_vm0, %v341_v37, 0  ;;  %v344_v24 = vld [vmem:[%s1728_s23 + $0x30] sm:$0xff] }
  0x32   : > { %v423_v26 = vand.u32 4294901760, %v1776_v20  ;;  %v496_v38 = vsub.f32 %v1771_v17, %v495_v28  ;;  %v503_v45 = vand.u32 4294901760, %v1804_v39  ;;  %v1816_v46 = vand.u32 4294901760, %v390_v41 }
  0x33   : > { %v488_v27 = vsub.f32 %v1768_v16, %v487_v22  ;;  %v569_v30 = vand.u32 4294901760, %v568_v25  ;;  %v432_v40 = vsub.f32 %v1781_v23, %v431_v32  ;;  %v439_v48 = vand.u32 4294901760, %v1811_v42 }
  0x34   : > { %v424_v31 = vsub.f32 %v1776_v20, %v423_v26  ;;  %v497_v44 = vand.u32 4294901760, %v496_v38  ;;  %v1819_v49 = vand.u32 4294901760, %v366_v43  ;;  %v504_v52 = vsub.f32 %v1804_v39, %v503_v45 }
  0x35   : > { %v489_v34 = vand.u32 4294901760, %v488_v27  ;;  %1388 = vmatpush.msra.mxu3 %v569_v30  ;;  %570 = vmatpush.msra.mxu1 %v569_v30  ;;  %v433_v47 = vand.u32 4294901760, %v432_v40  ;;  %v1828_v53 = vsub.f32 %v390_v41, %v1816_v46  ;;  %v440_v54 = vsub.f32 %v1811_v42, %v439_v48 }
  0x36   : > { %v425_v36 = vand.u32 4294901760, %v424_v31  ;;  %604 = vmatmul.f32.vlgmr.msra.gmra.mxu3 %v1757_v8  ;;  %572 = vmatmul.f32.vlgmr.msra.gmra.mxu1 %v1763_v13  ;;  %v393_v55 = vsel %vm355_vm0, %v350_v50, 0  ;;  %v1835_v56 = vsub.f32 %v366_v43, %v1819_v49  ;;  %v369_v57 = vsel %vm355_vm0, %v342_v51, 0 }
  0x37   : > { %490 = vmatmul.f32.vlgmr.msra.gmra.mxu2 %v489_v34  ;;  %751 = vmatpush.msrb.mxu3 %v419_v3  ;;  %v505_v58 = vand.u32 4294901760, %v504_v52  ;;  %v511_v59 = vand.u32 4294901760, %v1828_v53  ;;  %v1840_v60 = vand.u32 4294901760, %v393_v55  ;;  %v441_v61 = vand.u32 4294901760, %v440_v54 }
  0x38   : > { %426 = vmatmul.f32.vlgmr.msra.gmra.mxu0 %v425_v36  ;;  %949 = vmatpush.msrb.mxu1 %v419_v3  ;;  %v447_v62 = vand.u32 4294901760, %v1835_v56  ;;  %v1843_v63 = vand.u32 4294901760, %v369_v57  ;;  %v396_v5 = vsel %vm355_vm0, %v351_v0, 0  ;;  %v372_v7 = vsel %vm355_vm0, %v343_v1, 0 }
  0x39   : > { %v512_v2 = vsub.f32 %v1828_v53, %v511_v59  ;;  %v1852_v3 = vsub.f32 %v393_v55, %v1840_v60  ;;  %v1864_v12 = vand.u32 4294901760, %v396_v5  ;;  %v1867_v19 = vand.u32 4294901760, %v372_v7 }
  0x3a   : > { %v448_v4 = vsub.f32 %v1835_v56, %v447_v62  ;;  %v1859_v6 = vsub.f32 %v369_v57, %v1843_v63  ;;  %v399_v31 = vsel %vm355_vm0, %v352_v21, 0  ;;  %v375_v35 = vsel %vm355_vm0, %v344_v24, 0 }
  0x3b   : > { %v513_v10 = vand.u32 4294901760, %v512_v2  ;;  %v519_v11 = vand.u32 4294901760, %v1852_v3  ;;  %v1876_v27 = vsub.f32 %v396_v5, %v1864_v12  ;;  %v1883_v34 = vsub.f32 %v372_v7, %v1867_v19 }
  0x3c   : > { %v449_v14 = vand.u32 4294901760, %v448_v4  ;;  %v455_v15 = vand.u32 4294901760, %v1859_v6  ;;  %v1888_v38 = vand.u32 4294901760, %v399_v31  ;;  %v1891_v43 = vand.u32 4294901760, %v375_v35 }
  0x3d   : > { %v520_v25 = vsub.f32 %v1852_v3, %v519_v11  ;;  %v527_v37 = vand.u32 4294901760, %v1876_v27  ;;  %v463_v41 = vand.u32 4294901760, %v1883_v34 }
  0x3e   : > { %608 = vmatmul.f32.gmra.mxu3 %v1759_v9  ;;  %576 = vmatmul.f32.gmra.mxu1 %v1773_v18  ;;  %v456_v30 = vsub.f32 %v1859_v6, %v455_v15  ;;  %v1900_v51 = vsub.f32 %v399_v31, %v1888_v38  ;;  %v1907_v55 = vsub.f32 %v375_v35, %v1891_v43 }
  0x3f   : > { %498 = vmatmul.f32.gmra.mxu2 %v497_v44  ;;  %v521_v36 = vand.u32 4294901760, %v520_v25  ;;  %v353_v44 = vld [vmem:[%s1728_s23 + $0x78] sm:$0xff]  ;;  %v528_v50 = vsub.f32 %v1876_v27, %v527_v37  ;;  %v464_v52 = vsub.f32 %v1883_v34, %v463_v41 }
  0x40   : > { %434 = vmatmul.f32.gmra.mxu0 %v433_v47  ;;  %v457_v40 = vand.u32 4294901760, %v456_v30  ;;  %v345_v47 = vld [vmem:[%s1728_s23 + $0x38] sm:$0xff]  ;;  %v402_v54 = vsel %vm355_vm0, %v353_v44, 0  ;;  %v471_v2 = vand.u32 4294901760, %v1907_v55 }
  0x41   : > { %v378_v57 = vsel %vm355_vm0, %v345_v47, 0  ;;  %v1912_v0 = vand.u32 4294901760, %v402_v54  ;;  %v465_v1 = vand.u32 4294901760, %v464_v52  ;;  %v1015_v47 = vld [vmem:[%s1733_s21] sm:$0xff]  ;;  %v1017_v52 = vld [vmem:[%s1733_s21 + $0x10] sm:$0xff] }
  0x42   : > { %v1915_v4 = vand.u32 4294901760, %v378_v57 }
  0x43   : > { %v1922_v7 = vsub.f32 %v402_v54, %v1912_v0 }
  0x45   : > { %v543_v24 = vand.u32 4294901760, %v1922_v7 }
  0x46   : > { %612 = vmatmul.f32.gmra.mxu3 %v1789_v29  ;;  %580 = vmatmul.f32.gmra.mxu1 %v1795_v33 }
  0x47   : > { %506 = vmatmul.f32.gmra.mxu2 %v505_v58  ;;  %v529_v58 = vand.u32 4294901760, %v528_v50  ;;  %v544_v31 = vsub.f32 %v1922_v7, %v543_v24  ;;  %v1016_v50 = vld [vmem:[%s1733_s21 + $0x8] sm:$0xff] }
  0x48   : > { %442 = vmatmul.f32.gmra.mxu0 %v441_v61  ;;  %v535_v61 = vand.u32 4294901760, %v1900_v51 }
  0x4a   : > { %v536_v5 = vsub.f32 %v1900_v51, %v535_v61 }
  0x4c   : > { %v537_v21 = vand.u32 4294901760, %v536_v5  ;;  %v1026_v5 = vld [vmem:[%s1733_s21 + $0x58] sm:$0xff] }
  0x4e   : > { %616 = vmatmul.f32.gmra.mxu3 %v1816_v46  ;;  %584 = vmatmul.f32.gmra.mxu1 %v1819_v49 }
  0x4f   : > { %514 = vmatmul.f32.gmra.mxu2 %v513_v10  ;;  %v472_v10 = vsub.f32 %v1907_v55, %v471_v2 }
  0x50   : > { %450 = vmatmul.f32.gmra.mxu0 %v449_v14  ;;  %v1928_v14 = vsub.f32 %v378_v57, %v1915_v4 }
  0x51   : > { %v473_v25 = vand.u32 4294901760, %v472_v10 }
  0x52   : > { %v479_v30 = vand.u32 4294901760, %v1928_v14 }
  0x54   : > { %v480_v35 = vsub.f32 %v1928_v14, %v479_v30 }
  0x56   : > { %620 = vmatmul.f32.gmra.mxu3 %v1840_v60  ;;  %588 = vmatmul.f32.gmra.mxu1 %v1843_v63  ;;  %v481_v44 = vand.u32 4294901760, %v480_v35 }
  0x57   : > { %522 = vmatmul.f32.gmra.mxu2 %v521_v36  ;;  %v1600_v36 = vmov 0  }
  0x58   : > { %458 = vmatmul.f32.gmra.mxu0 %v457_v40  ;;  %1484 = vset.pattern.permute.xlu0 %v1600_v36  ;;  %v545_v40 = vand.u32 4294901760, %v544_v31 }
  0x59   : > { %1485 = vset.pattern.permute.xlu1 %v1600_v36  ;;  %1486 = vset.pattern.permute.xlu2 %v1600_v36 }
  0x5a   : > { %1034 = vperm.xlu0 %1484, %v1015_v47   ;;  %1044 = vperm.xlu1 %1485, %v1017_v52  }
  0x5e   : > { %624 = vmatmul.f32.gmra.mxu3 %v1864_v12  ;;  %592 = vmatmul.f32.gmra.mxu1 %v1867_v19 }
  0x5f   : > { %530 = vmatmul.f32.gmra.mxu2 %v529_v58 }
  0x60   : > { %466 = vmatmul.f32.gmra.mxu0 %v465_v1 }
  0x62   : > { %1039 = vperm.xlu0 %1484, %v1016_v50  }
  0x66   : > { %628 = vmatmul.f32.gmra.mxu3 %v1888_v38  ;;  %596 = vmatmul.f32.gmra.mxu1 %v1891_v43 }
  0x67   : > { %538 = vmatmul.f32.gmra.mxu2 %v537_v21 }
  0x68   : > { %474 = vmatmul.f32.gmra.mxu0 %v473_v25 }
  0x6e   : > { %632 = vmatmul.f32.gmra.mxu3 %v1912_v0  ;;  %600 = vmatmul.f32.gmra.mxu1 %v1915_v4 }
  0x6f   : > { %546 = vmatmul.f32.gmra.mxu2 %v545_v40 }
  0x70   : > { %482 = vmatmul.f32.gmra.mxu0 %v481_v44 }
  0x76   : > { %755 = vmatmul.f32.vlgmr.msrb.gmra.mxu3 %v423_v26  ;;  %951 = vmatmul.f32.vlgmr.msrb.gmra.mxu1 %v1763_v13  ;;  %v1020_v26 = vld [vmem:[%s1733_s21 + $0x28] sm:$0xff] }
  0x77   : > { %656 = vmatmul.f32.vlgmr.msrb.gmra.mxu2 %v1776_v20  ;;  %v1018_v20 = vld [vmem:[%s1733_s21 + $0x18] sm:$0xff] }
  0x78   : > { %869 = vmatmul.f32.vlgmr.msrb.gmra.mxu0 %v1763_v13  ;;  %1049 = vperm.xlu1 %1485, %v1018_v20   ;;  %v1021_v13 = vld [vmem:[%s1733_s21 + $0x30] sm:$0xff] }
  0x79   : > { %1064 = vperm.xlu0 %1484, %v1021_v13  }
  0x7e   : > { %761 = vmatmul.f32.gmra.mxu3 %v431_v32  ;;  %955 = vmatmul.f32.gmra.mxu1 %v1773_v18  ;;  %v1024_v32 = vld [vmem:[%s1733_s21 + $0x48] sm:$0xff] }
  0x7f   : > { %661 = vmatmul.f32.gmra.mxu2 %v1781_v23  ;;  %v1022_v23 = vld [vmem:[%s1733_s21 + $0x38] sm:$0xff] }
  0x80   : > { %873 = vmatmul.f32.gmra.mxu0 %v1773_v18  ;;  %v1019_v18 = vld [vmem:[%s1733_s21 + $0x20] sm:$0xff]  ;;  %1069 = vperm.xlu1 %1485, %v1022_v23  }
  0x81   : > { %1054 = vperm.xlu2 %1486, %v1019_v18   ;;  %1079 = vperm.xlu0 %1484, %v1024_v32  }
  0x86   : > { %767 = vmatmul.f32.gmra.mxu3 %v439_v48  ;;  %959 = vmatmul.f32.gmra.mxu1 %v1795_v33 }
  0x87   : > { %666 = vmatmul.f32.gmra.mxu2 %v1811_v42 }
  0x88   : > { %877 = vmatmul.f32.gmra.mxu0 %v1795_v33 }
  0x89   : > { %1059 = vperm.xlu2 %1486, %v1020_v26  }
  0x8e   : > { %773 = vmatmul.f32.gmra.mxu3 %v447_v62  ;;  %963 = vmatmul.f32.gmra.mxu1 %v1819_v49 }
  0x8f   : > { %671 = vmatmul.f32.gmra.mxu2 %v1835_v56 }
  0x90   : > { %881 = vmatmul.f32.gmra.mxu0 %v1819_v49  ;;  %v1027_v49 = vld [vmem:[%s1733_s21 + $0x60] sm:$0xff] }
  0x91   : > { %1094 = vperm.xlu0 %1484, %v1027_v49  }
  0x96   : > { %779 = vmatmul.f32.gmra.mxu3 %v455_v15  ;;  %967 = vmatmul.f32.gmra.mxu1 %v1843_v63 }
  0x97   : > { %676 = vmatmul.f32.gmra.mxu2 %v1859_v6 }
  0x98   : > { %885 = vmatmul.f32.gmra.mxu0 %v1843_v63 }
  0x9e   : > { %785 = vmatmul.f32.gmra.mxu3 %v463_v41  ;;  %971 = vmatmul.f32.gmra.mxu1 %v1867_v19 }
  0x9f   : > { %681 = vmatmul.f32.gmra.mxu2 %v1883_v34 }
  0xa0   : > { %889 = vmatmul.f32.gmra.mxu0 %v1867_v19  ;;  %v1030_v19 = vld [vmem:[%s1733_s21 + $0x78] sm:$0xff] }
  0xa1   : > { %1109 = vperm.xlu0 %1484, %v1030_v19  }
  0xa6   : > { %791 = vmatmul.f32.gmra.mxu3 %v471_v2  ;;  %975 = vmatmul.f32.gmra.mxu1 %v1891_v43 }
  0xa7   : > { %686 = vmatmul.f32.gmra.mxu2 %v1907_v55  ;;  %v1028_v55 = vld [vmem:[%s1733_s21 + $0x68] sm:$0xff] }
  0xa8   : > { %893 = vmatmul.f32.gmra.mxu0 %v1891_v43 }
  0xae   : > { %797 = vmatmul.f32.gmra.mxu3 %v479_v30  ;;  %979 = vmatmul.f32.gmra.mxu1 %v1915_v4 }
  0xaf   : > { %691 = vmatmul.f32.gmra.mxu2 %v1928_v14 }
  0xb0   : > { %897 = vmatmul.f32.gmra.mxu0 %v1915_v4 }
  0xb3   : > { %v573_v42 = vpop.f32.mrf.mxu1 }
  0xb5   : > { %v427_v33 = vpop.f32.mrf.mxu0 }
  0xb6   : > { %803 = vmatmul.f32.gmra.mxu3 %v487_v22  ;;  %v1991_v48 = vadd.f32 %v573_v42, %v427_v33  ;;  %983 = vmatmul.f32.gmra.mxu1 %v1757_v8  ;;  %v1025_v22 = vld [vmem:[%s1733_s21 + $0x50] sm:$0xff] }
  0xb7   : > { %696 = vmatmul.f32.gmra.mxu2 %v1768_v16  ;;  %1084 = vperm.xlu1 %1485, %v1025_v22  }
  0xb8   : > { %901 = vmatmul.f32.gmra.mxu0 %v1757_v8 }
  0xb9   : > { %v605_v62 = vpop.f32.mrf.mxu3 }
  0xba   : > { %v491_v56 = vpop.f32.mrf.mxu2 }
  0xbb   : > { %v1996_v63 = vadd.f32 %v605_v62, %v491_v56  ;;  %v577_v15 = vpop.f32.mrf.mxu1 }
  0xbd   : > { %v435_v6 = vpop.f32.mrf.mxu0 }
  0xbe   : > { %809 = vmatmul.f32.gmra.mxu3 %v495_v28  ;;  %v2001_v16 = vadd.f32 %v577_v15, %v435_v6  ;;  %987 = vmatmul.f32.gmra.mxu1 %v1759_v9  ;;  %v1023_v28 = vld [vmem:[%s1733_s21 + $0x40] sm:$0xff] }
  0xbf   : > { %701 = vmatmul.f32.gmra.mxu2 %v1771_v17  ;;  %1074 = vperm.xlu2 %1486, %v1023_v28  }
  0xc0   : > { %905 = vmatmul.f32.gmra.mxu0 %v1759_v9  ;;  %1099 = vperm.xlu1 %1485, %v1028_v55  }
  0xc1   : > { %v609_v34 = vpop.f32.mrf.mxu3 }
  0xc2   : > { %v499_v8 = vpop.f32.mrf.mxu2 }
  0xc3   : > { %v2007_v41 = vadd.f32 %v609_v34, %v499_v8  ;;  %v581_v54 = vpop.f32.mrf.mxu1 }
  0xc5   : > { %v443_v43 = vpop.f32.mrf.mxu0 }
  0xc6   : > { %815 = vmatmul.f32.gmra.mxu3 %v503_v45  ;;  %v2012_v17 = vadd.f32 %v581_v54, %v443_v43  ;;  %991 = vmatmul.f32.gmra.mxu1 %v1789_v29 }
  0xc7   : > { %706 = vmatmul.f32.gmra.mxu2 %v1804_v39  ;;  %1089 = vperm.xlu2 %1486, %v1026_v5  }
  0xc8   : > { %909 = vmatmul.f32.gmra.mxu0 %v1789_v29 }
  0xc9   : > { %v613_v57 = vpop.f32.mrf.mxu3 }
  0xca   : > { %v507_v9 = vpop.f32.mrf.mxu2 }
  0xcb   : > { %v2018_v58 = vadd.f32 %v613_v57, %v507_v9  ;;  %v585_v2 = vpop.f32.mrf.mxu1 }
  0xcd   : > { %v451_v1 = vpop.f32.mrf.mxu0 }
  0xce   : > { %821 = vmatmul.f32.gmra.mxu3 %v511_v59  ;;  %v2023_v39 = vadd.f32 %v585_v2, %v451_v1  ;;  %995 = vmatmul.f32.gmra.mxu1 %v1816_v46 }
  0xcf   : > { %711 = vmatmul.f32.gmra.mxu2 %v1828_v53 }
  0xd0   : > { %913 = vmatmul.f32.gmra.mxu0 %v1816_v46 }
  0xd1   : > { %v617_v29 = vpop.f32.mrf.mxu3 }
  0xd2   : > { %v515_v45 = vpop.f32.mrf.mxu2 }
  0xd3   : > { %v2027_v4 = vadd.f32 %v617_v29, %v515_v45  ;;  %v589_v14 = vpop.f32.mrf.mxu1 }
  0xd5   : > { %v459_v10 = vpop.f32.mrf.mxu0 }
  0xd6   : > { %827 = vmatmul.f32.gmra.mxu3 %v519_v11  ;;  %v2033_v53 = vadd.f32 %v589_v14, %v459_v10  ;;  %999 = vmatmul.f32.gmra.mxu1 %v1840_v60  ;;  %v1035_v10 = vpop.permute.xlu0 %1034 }
  0xd7   : > { %716 = vmatmul.f32.gmra.mxu2 %v1852_v3  ;;  %v1029_v3 = vld [vmem:[%s1733_s21 + $0x70] sm:$0xff] }
  0xd8   : > { %917 = vmatmul.f32.gmra.mxu0 %v1840_v60  ;;  %1104 = vperm.xlu2 %1486, %v1029_v3  }
  0xd9   : > { %v621_v59 = vpop.f32.mrf.mxu3 }
  0xda   : > { %v523_v46 = vpop.f32.mrf.mxu2 }
  0xdb   : > { %v2037_v21 = vadd.f32 %v621_v59, %v523_v46  ;;  %v593_v30 = vpop.f32.mrf.mxu1 }
  0xdd   : > { %v467_v25 = vpop.f32.mrf.mxu0 }
  0xde   : > { %833 = vmatmul.f32.gmra.mxu3 %v527_v37  ;;  %v2042_v31 = vadd.f32 %v593_v30, %v467_v25  ;;  %1003 = vmatmul.f32.gmra.mxu1 %v1864_v12  ;;  %v1055_v30 = vpop.permute.xlu2 %1054 }
  0xdf   : > { %721 = vmatmul.f32.gmra.mxu2 %v1876_v27 }
  0xe0   : > { %921 = vmatmul.f32.gmra.mxu0 %v1864_v12 }
  0xe1   : > { %v625_v11 = vpop.f32.mrf.mxu3 }
  0xe2   : > { %v531_v60 = vpop.f32.mrf.mxu2 }
  0xe3   : > { %v2047_v35 = vadd.f32 %v625_v11, %v531_v60  ;;  %v597_v40 = vpop.f32.mrf.mxu1 }
  0xe5   : > { %v475_v36 = vpop.f32.mrf.mxu0 }
  0xe6   : > { %839 = vmatmul.f32.gmra.mxu3 %v535_v61  ;;  %v2052_v27 = vadd.f32 %v597_v40, %v475_v36  ;;  %1007 = vmatmul.f32.gmra.mxu1 %v1888_v38 }
  0xe7   : > { %726 = vmatmul.f32.gmra.mxu2 %v1900_v51 }
  0xe8   : > { %925 = vmatmul.f32.gmra.mxu0 %v1888_v38 }
  0xe9   : > { %v629_v44 = vpop.f32.mrf.mxu3 }
  0xea   : > { %v539_v37 = vpop.f32.mrf.mxu2 }
  0xeb   : > { %v2056_v12 = vadd.f32 %v629_v44, %v539_v37  ;;  %v601_v50 = vpop.f32.mrf.mxu1 }
  0xed   : > { %v483_v47 = vpop.f32.mrf.mxu0 }
  0xee   : > { %845 = vmatmul.f32.gmra.mxu3 %v543_v24  ;;  %v2061_v52 = vadd.f32 %v601_v50, %v483_v47  ;;  %1011 = vmatmul.f32.gmra.mxu1 %v1912_v0 }
  0xef   : > { %731 = vmatmul.f32.gmra.mxu2 %v1922_v7 }
  0xf0   : > { %929 = vmatmul.f32.gmra.mxu0 %v1912_v0 }
  0xf1   : > { %v633_v61 = vpop.f32.mrf.mxu3 }
  0xf2   : > { %v547_v51 = vpop.f32.mrf.mxu2 }
  0xf3   : > { %v2065_v38 = vadd.f32 %v633_v61, %v547_v51  ;;  %v952_v13 = vpop.f32.mrf.mxu1  ;;  %v1040_v61 = vpop.permute.xlu0 %1039 }
  0xf5   : > { %v870_v20 = vpop.f32.mrf.mxu0 }
  0xf9   : > { %v756_v23 = vpop.f32.mrf.mxu3 }
  0xfa   : > { %v657_v18 = vpop.f32.mrf.mxu2 }
  0xfb   : > { %v658_v26 = vadd.f32 %v657_v18, %v1991_v48  ;;  %v956_v7 = vpop.f32.mrf.mxu1 }
  0xfd   : > { %v757_v32 = vadd.f32 %v756_v23, %v658_v26  ;;  %v874_v33 = vpop.f32.mrf.mxu0 }
  0xff   : > { %v871_v24 = vadd.f32 %v870_v20, %v757_v32  ;;  %v1045_v20 = vpop.permute.xlu1 %1044 }
 0x101   : > { %v953_v42 = vadd.f32 %v952_v13, %v871_v24  ;;  %v762_v56 = vpop.f32.mrf.mxu3 }
 0x102   : > { %v662_v49 = vpop.f32.mrf.mxu2 }
 0x103   : > { %v663_v62 = vadd.f32 %v662_v49, %v2001_v16  ;;  %v960_v15 = vpop.f32.mrf.mxu1  ;;  %v1131_v11 = vmul.f32 2.0, %v953_v42 }
 0x105   : > { %v763_v0 = vadd.f32 %v762_v56, %v663_v62  ;;  %v878_v6 = vpop.f32.mrf.mxu0 }
 0x107   : > { %v875_v22 = vadd.f32 %v874_v33, %v763_v0  ;;  %v1060_v33 = vpop.permute.xlu2 %1059 }
 0x109   : > { %v957_v19 = vadd.f32 %v956_v7, %v875_v22  ;;  %v768_v34 = vpop.f32.mrf.mxu3 }
 0x10a   : > { %v667_v8 = vpop.f32.mrf.mxu2 }
 0x10b   : > { %v668_v43 = vadd.f32 %v667_v8, %v2012_v17  ;;  %v964_v28 = vpop.f32.mrf.mxu1  ;;  %v2078_v17 = vld [vmem:[%s329_s8] ss:$0 sm:$0xff]  ;;  %v1132_v42 = vmul.f32 2.0, %v957_v19 }
 0x10c   : > { %v1115_v36 = vadd.f32 %v2078_v17, %v1035_v10  ;;  %v1119_v44 = vadd.f32 %v2078_v17, %v1055_v30  ;;  %v1116_v32 = vadd.f32 %v2078_v17, %v1040_v61  ;;  %v1117_v19 = vadd.f32 %v2078_v17, %v1045_v20 }
 0x10d   : > { %v769_v54 = vadd.f32 %v768_v34, %v668_v43  ;;  %v882_v48 = vpop.f32.mrf.mxu0  ;;  %v1050_v43 = vpop.permute.xlu1 %1049 }
 0x10e   : > { %v1147_v51 = vsub.f32 %v1115_v36, %v1131_v11  ;;  %v1148_v22 = vsub.f32 %v1116_v32, %v1132_v42 }
 0x10f   : > { %v879_v55 = vadd.f32 %v878_v6, %v769_v54  ;;  %v1120_v6 = vadd.f32 %v2078_v17, %v1060_v33 }
 0x110   : > { %v2085_v24 = vmax.f32 %v1147_v51, 0.0 }
 0x111   : > { %v961_v9 = vadd.f32 %v960_v15, %v879_v55  ;;  %v774_v1 = vpop.f32.mrf.mxu3  ;;  %v1065_v55 = vpop.permute.xlu0 %1064 }
 0x112   : > { %v672_v57 = vpop.f32.mrf.mxu2 }
 0x113   : > { %v673_v2 = vadd.f32 %v672_v57, %v2023_v39  ;;  %v968_v29 = vpop.f32.mrf.mxu1 }
 0x115   : > { %v775_v16 = vadd.f32 %v774_v1, %v673_v2  ;;  %v886_v45 = vpop.f32.mrf.mxu0  ;;  %v2094_v1 = vmax.f32 %v1148_v22, 0.0  ;;  %v1133_v2 = vmul.f32 2.0, %v961_v9  ;;  %v1118_v9 = vadd.f32 %v2078_v17, %v1050_v43  ;;  %v1070_v11 = vpop.permute.xlu1 %1069 }
 0x116   : > { %v1122_v61 = vadd.f32 %v2078_v17, %v1070_v11 }
 0x117   : > { %v883_v5 = vadd.f32 %v882_v48, %v775_v16 }
 0x119   : > { %v2071_v14 = vadd.f32 %v964_v28, %v883_v5  ;;  %v780_v59 = vpop.f32.mrf.mxu3  ;;  %v1075_v33 = vpop.permute.xlu2 %1074 }
 0x11a   : > { %v677_v46 = vpop.f32.mrf.mxu2 }
 0x11b   : > { %v678_v25 = vadd.f32 %v677_v46, %v2033_v53  ;;  %v972_v60 = vpop.f32.mrf.mxu1 }
 0x11d   : > { %v781_v3 = vadd.f32 %v780_v59, %v678_v25  ;;  %v890_v39 = vpop.f32.mrf.mxu0  ;;  %v1149_v59 = vsub.f32 %v1117_v19, %v1133_v2 }
 0x11f   : > { %v887_v40 = vadd.f32 %v886_v45, %v781_v3 }
 0x121   : > { %v969_v37 = vadd.f32 %v968_v29, %v887_v40  ;;  %v786_v50 = vpop.f32.mrf.mxu3  ;;  %v2103_v40 = vmax.f32 %v1149_v59, 0.0 }
 0x122   : > { %v682_v47 = vpop.f32.mrf.mxu2 }
 0x123   : > { %v1135_v13 = vmul.f32 2.0, %v969_v37  ;;  %v683_v18 = vadd.f32 %v682_v47, %v2042_v31  ;;  %v976_v7 = vpop.f32.mrf.mxu1  ;;  %v1134_v37 = vmul.f32 2.0, %v2071_v14 }
 0x125   : > { %v1151_v53 = vsub.f32 %v1119_v44, %v1135_v13  ;;  %v787_v23 = vadd.f32 %v786_v50, %v683_v18  ;;  %v894_v26 = vpop.f32.mrf.mxu0  ;;  %v1150_v13 = vsub.f32 %v1118_v9, %v1134_v37 }
 0x127   : > { %v2087_v49 = vmax.f32 %v1151_v53, 0.0  ;;  %v891_v56 = vadd.f32 %v890_v39, %v787_v23  ;;  %v1166_v42 = vmax.f32 %v1150_v13, 0.0 }
 0x129   : > { %v1179_v62 = vmax.f32 %v2085_v24, %v2087_v49  ;;  %v973_v0 = vadd.f32 %v972_v60, %v891_v56  ;;  %v792_v15 = vpop.f32.mrf.mxu3  ;;  %v1085_v59 = vpop.permute.xlu1 %1084 }
 0x12a   : > { %v687_v31 = vpop.f32.mrf.mxu2  ;;  %v1125_v24 = vadd.f32 %v2078_v17, %v1085_v59 }
 0x12b   : > { %v1136_v8 = vmul.f32 2.0, %v973_v0  ;;  %v688_v34 = vadd.f32 %v687_v31, %v2052_v27  ;;  %v980_v57 = vpop.f32.mrf.mxu1  ;;  %v1121_v27 = vadd.f32 %v2078_v17, %v1065_v55  ;;  %v1123_v31 = vadd.f32 %v2078_v17, %v1075_v33  ;;  %v1080_v55 = vpop.permute.xlu0 %1079 }
 0x12d   : > { %v1152_v54 = vsub.f32 %v1120_v6, %v1136_v8  ;;  %v793_v48 = vadd.f32 %v792_v15, %v688_v34  ;;  %v898_v28 = vpop.f32.mrf.mxu0 }
 0x12f   : > { %v2096_v16 = vmax.f32 %v1152_v54, 0.0  ;;  %v895_v45 = vadd.f32 %v894_v26, %v793_v48 }
 0x131   : > { %v1180_v29 = vmax.f32 %v2094_v1, %v2096_v16  ;;  %v977_v5 = vadd.f32 %v976_v7, %v895_v45  ;;  %v798_v46 = vpop.f32.mrf.mxu3  ;;  %v1124_v1 = vadd.f32 %v2078_v17, %v1080_v55 }
 0x132   : > { %v692_v10 = vpop.f32.mrf.mxu2 }
 0x133   : > { %v1137_v25 = vmul.f32 2.0, %v977_v5  ;;  %v693_v30 = vadd.f32 %v692_v10, %v2061_v52  ;;  %v984_v36 = vpop.f32.mrf.mxu1 }
 0x135   : > { %v1153_v3 = vsub.f32 %v1121_v27, %v1137_v25  ;;  %v799_v39 = vadd.f32 %v798_v46, %v693_v30  ;;  %v902_v60 = vpop.f32.mrf.mxu0 }
 0x137   : > { %v1169_v44 = vmax.f32 %v1153_v3, 0.0  ;;  %v899_v47 = vadd.f32 %v898_v28, %v799_v39 }
 0x139   : > { %v1181_v50 = vmax.f32 %v2103_v40, %v1169_v44  ;;  %v981_v51 = vadd.f32 %v980_v57, %v899_v47  ;;  %v804_v52 = vpop.f32.mrf.mxu3 }
 0x13a   : > { %v697_v20 = vpop.f32.mrf.mxu2 }
 0x13b   : > { %v1138_v18 = vmul.f32 2.0, %v981_v51  ;;  %v698_v53 = vadd.f32 %v697_v20, %v1996_v63  ;;  %v988_v7 = vpop.f32.mrf.mxu1  ;;  %v1090_v51 = vpop.permute.xlu2 %1089 }
 0x13d   : > { %v1154_v23 = vsub.f32 %v1122_v61, %v1138_v18  ;;  %v805_v26 = vadd.f32 %v804_v52, %v698_v53  ;;  %v906_v32 = vpop.f32.mrf.mxu0  ;;  %v1126_v61 = vadd.f32 %v2078_v17, %v1090_v51 }
 0x13f   : > { %v1170_v14 = vmax.f32 %v1154_v23, 0.0  ;;  %v903_v56 = vadd.f32 %v902_v60, %v805_v26 }
 0x141   : > { %v1182_v0 = vmax.f32 %v1166_v42, %v1170_v14  ;;  %v985_v6 = vadd.f32 %v984_v36, %v903_v56  ;;  %v810_v22 = vpop.f32.mrf.mxu3 }
 0x142   : > { %v702_v15 = vpop.f32.mrf.mxu2 }
 0x143   : > { %v1139_v8 = vmul.f32 2.0, %v985_v6  ;;  %v703_v34 = vadd.f32 %v702_v15, %v2007_v41  ;;  %v992_v48 = vpop.f32.mrf.mxu1 }
 0x145   : > { %v1155_v43 = vsub.f32 %v1123_v31, %v1139_v8  ;;  %v811_v54 = vadd.f32 %v810_v22, %v703_v34  ;;  %v910_v63 = vpop.f32.mrf.mxu0 }
 0x147   : > { %v1171_v28 = vmax.f32 %v1155_v43, 0.0  ;;  %v907_v19 = vadd.f32 %v906_v32, %v811_v54  ;;  %v1100_v54 = vpop.permute.xlu1 %1099 }
 0x148   : > { %v1128_v55 = vadd.f32 %v2078_v17, %v1100_v54 }
 0x149   : > { %v2114_v57 = vmax.f32 %v1179_v62, %v1171_v28  ;;  %v989_v2 = vadd.f32 %v988_v7, %v907_v19  ;;  %v816_v45 = vpop.f32.mrf.mxu3  ;;  %v1095_v7 = vpop.permute.xlu0 %1094 }
 0x14a   : > { %v707_v16 = vpop.f32.mrf.mxu2  ;;  %v1127_v15 = vadd.f32 %v2078_v17, %v1095_v7 }
 0x14b   : > { %v1140_v5 = vmul.f32 2.0, %v989_v2  ;;  %v708_v41 = vadd.f32 %v707_v16, %v2018_v58  ;;  %v996_v25 = vpop.f32.mrf.mxu1 }
 0x14d   : > { %v1156_v27 = vsub.f32 %v1124_v1, %v1140_v5  ;;  %v817_v10 = vadd.f32 %v816_v45, %v708_v41  ;;  %v914_v46 = vpop.f32.mrf.mxu0 }
 0x14f   : > { %v1172_v30 = vmax.f32 %v1156_v27, 0.0  ;;  %v911_v3 = vadd.f32 %v910_v63, %v817_v10  ;;  %v1105_v27 = vpop.permute.xlu2 %1104 }
 0x151   : > { %v1184_v39 = vmax.f32 %v1180_v29, %v1172_v30  ;;  %v993_v60 = vadd.f32 %v992_v48, %v911_v3  ;;  %v822_v62 = vpop.f32.mrf.mxu3  ;;  %v1129_v30 = vadd.f32 %v2078_v17, %v1105_v27 }
 0x152   : > { %v712_v49 = vpop.f32.mrf.mxu2 }
 0x153   : > { %v1141_v9 = vmul.f32 2.0, %v993_v60  ;;  %v713_v11 = vadd.f32 %v712_v49, %v2027_v4  ;;  %v1000_v47 = vpop.f32.mrf.mxu1 }
 0x155   : > { %v1157_v36 = vsub.f32 %v1125_v24, %v1141_v9  ;;  %v823_v40 = vadd.f32 %v822_v62, %v713_v11  ;;  %v918_v37 = vpop.f32.mrf.mxu0 }
 0x157   : > { %v1173_v58 = vmax.f32 %v1157_v36, 0.0  ;;  %v915_v44 = vadd.f32 %v914_v46, %v823_v40  ;;  %v1110_v36 = vpop.permute.xlu0 %1109 }
 0x159   : > { %v1185_v20 = vmax.f32 %v1181_v50, %v1173_v58  ;;  %v997_v52 = vadd.f32 %v996_v25, %v915_v44  ;;  %v828_v13 = vpop.f32.mrf.mxu3  ;;  %v1130_v58 = vadd.f32 %v2078_v17, %v1110_v36 }
 0x15a   : > { %v717_v29 = vpop.f32.mrf.mxu2 }
 0x15b   : > { %v1142_v18 = vmul.f32 2.0, %v997_v52  ;;  %v718_v53 = vadd.f32 %v717_v29, %v2037_v21  ;;  %v1004_v56 = vpop.f32.mrf.mxu1 }
 0x15d   : > { %v1158_v23 = vsub.f32 %v1126_v61, %v1142_v18  ;;  %v829_v26 = vadd.f32 %v828_v13, %v718_v53  ;;  %v922_v33 = vpop.f32.mrf.mxu0 }
 0x15f   : > { %v1174_v32 = vmax.f32 %v1158_v23, 0.0  ;;  %v919_v4 = vadd.f32 %v918_v37, %v829_v26 }
 0x161   : > { %v1186_v42 = vmax.f32 %v1182_v0, %v1174_v32  ;;  %v1001_v14 = vadd.f32 %v1000_v47, %v919_v4  ;;  %v834_v31 = vpop.f32.mrf.mxu3 }
 0x162   : > { %v722_v6 = vpop.f32.mrf.mxu2 }
 0x163   : > { %v1143_v50 = vmul.f32 2.0, %v1001_v14  ;;  %v723_v22 = vadd.f32 %v722_v6, %v2047_v35  ;;  %v1008_v16 = vpop.f32.mrf.mxu1 }
 0x165   : > { %v1159_v8 = vsub.f32 %v1127_v15, %v1143_v50  ;;  %v835_v34 = vadd.f32 %v834_v31, %v723_v22  ;;  %v926_v48 = vpop.f32.mrf.mxu0 }
 0x167   : > { %v1175_v43 = vmax.f32 %v1159_v8, 0.0  ;;  %v923_v21 = vadd.f32 %v922_v33, %v835_v34 }
 0x169   : > { %v1005_v63 = vadd.f32 %v1004_v56, %v923_v21  ;;  %v1187_v28 = vmax.f32 %v2114_v57, %v1175_v43  ;;  %v840_v0 = vpop.f32.mrf.mxu3 }
 0x16a   : > { %v727_v19 = vpop.f32.mrf.mxu2 }
 0x16b   : > { %v1144_v1 = vmul.f32 2.0, %v1005_v63  ;;  %v728_v2 = vadd.f32 %v727_v19, %v2056_v12  ;;  %v1012_v12 = vpop.f32.mrf.mxu1 }
 0x16d   : > { %v1160_v45 = vsub.f32 %v1128_v55, %v1144_v1  ;;  %v841_v5 = vadd.f32 %v840_v0, %v728_v2  ;;  %v930_v24 = vpop.f32.mrf.mxu0 }
 0x16f   : > { %v1176_v35 = vmax.f32 %v1160_v45, 0.0  ;;  %v927_v41 = vadd.f32 %v926_v48, %v841_v5 }
 0x171   : > { %v1009_v10 = vadd.f32 %v1008_v16, %v927_v41  ;;  %v1188_v46 = vmax.f32 %v1184_v39, %v1176_v35  ;;  %v846_v25 = vpop.f32.mrf.mxu3 }
 0x172   : > { %v732_v59 = vpop.f32.mrf.mxu2 }
 0x173   : > { %v1145_v57 = vmul.f32 2.0, %v1009_v10  ;;  %v733_v3 = vadd.f32 %v732_v59, %v2065_v38  ;;  %v1191_v60 = vmax.f32 %v1187_v28, %v1188_v46 }
 0x175   : > { %v1161_v49 = vsub.f32 %v1129_v30, %v1145_v57  ;;  %v847_v62 = vadd.f32 %v846_v25, %v733_v3 }
 0x177   : > { %v1177_v9 = vmax.f32 %v1161_v49, 0.0  ;;  %v931_v11 = vadd.f32 %v930_v24, %v847_v62 }
 0x179   : > { %v1013_v40 = vadd.f32 %v1012_v12, %v931_v11  ;;  %v1189_v37 = vmax.f32 %v1185_v20, %v1177_v9 }
 0x17b   : > { %v1146_v39 = vmul.f32 2.0, %v1013_v40 }
 0x17d   : > { %v1162_v44 = vsub.f32 %v1130_v58, %v1146_v39 }
 0x17f   : > { %v1178_v47 = vmax.f32 %v1162_v44, 0.0 }
 0x181   : > { %v1190_v51 = vmax.f32 %v1186_v42, %v1178_v47 }
 0x183   : > { %v1192_v61 = vmax.f32 %v1189_v37, %v1190_v51 }
 0x185   : > { %v1193_v52 = vmax.f32 %v1191_v60, %v1192_v61 }
 0x187   : > { %1194 = vmax.xlane.f32.xlu1 %v1193_v52 }
 0x1fa   : > { %v1195_v38 = vpop.xlane.xlu1 %1194 }
 0x1fb   : > { %v1196_v29 = vrot.slane %v1195_v38, 4 }
 0x1fd   : > { %v1197_v13 = vmax.f32 %v1195_v38, %v1196_v29 }
 0x1ff   : > { %v1198_v18 = vrot.slane %v1197_v13, 2 }
 0x201   : > { %v1199_v53 = vmax.f32 %v1197_v13, %v1198_v18 }
 0x203   : > { %v1200_v23 = vrot.slane %v1199_v53, 1 }
 0x205   : > { %v1201_v26 = vmax.f32 %v1199_v53, %v1200_v23 }
 0x207   : > { %1391 = vpush %v1201_v26 }
 0x238   : > { %s1392_s17 = spop %1391 }
 0x239   : > { %v1203_v20 = vstv %s1392_s17 }
 0x23a   : > { %1204 = vst [vmem:[%s1746_s27] sm:$0xff] %v1203_v20 }
 0x23b PF: > { %s2212_s29 = sshll.u32 %s1578_s19, 7 }
 0x23c   : > { %p1380_p3 = scmp.gt.s32.totalorder %s1722_s10, %s2212_s29 }
 0x23e   : > { %1207 = sbr.rel (%p1380_p3) target bundleno = 581 (0x245), region = 44 }
 0x243   : > { %v1601_v17 = vmov 0.0  }
 0x244   : > { %1208 = vst [vmem:[%s1746_s27] sm:$0xff] %v1601_v17 }
 0x245 PF: > { %s1393_s12 = smul.u32 3, %s1578_s19  ;;  %s1226_s7 = sshll.u32 %s1746_s27, 4  ;;  %s1227_s7 = int_to_ptr.vmem [resolvable:$true] %s1226_s7 }
 0x246   : > { %s1394_s13 = smul.u32 9, %s1582_s20  ;;  %s2213_s9 = sand.u32 1, %s1566_s16  }
 0x247   : > { %s1220_s25 = sadd.s32 %s1574_s18, %s1393_s12  ;;  %s1210_s26 = scalar_lea.sflag [#allocation3], %s2213_s9 }
 0x248   : > { %s1222_s11 = sadd.s32 %s1394_s13, %s1220_s25  ;;  %s1508_s20 = scalar_lea.hbm %s2192_s4, 144 }
 0x249   : > { %s1382_s14 = sshll.u32 %s1222_s11, 3 }
 0x24a   : > { %s1224_s10 = scalar_lea.hbm %s2192_s4, %s1382_s14 }
 0x24b   : > { %s1228_s8 = sshll.u32 %s1224_s10, 4  ;;  %s1229_s8 = int_to_ptr.hbm [resolvable:$true] %s1228_s8 }
 0x24c   : > { %s1502_s22 = sshra.s32 %s1229_s8, 4  ;;  %s1503_s22 = int_to_ptr.hbm [resolvable:$true] %s1502_s22 }
 0x24d   : > { %s1504_s21 = scalar_lea.hbm %s1503_s22, 8  ;;  %p1509_p9 = scmp.lt.s32.totalorder %s1503_s22, %s2192_s4 }
 0x24e   : > { %p1505_p4 = scmp.ne.s32.totalorder %s1503_s22, %s1504_s21  ;;  %p1510_p10 = scmp.lt.s32.totalorder %s1508_s20, %s1504_s21 }
 0x250   : > { %p1506_p6 = pnand %p1505_p4, %p1689_p5  ;;  %p1511_p11 = por %p1510_p10, %p1509_p9 }
 0x252   : > { %p1507_p8 = pneg %p1506_p6 }
 0x254   : > { %p1512_p12 = pnand %p1511_p11, %p1507_p8 }
 0x256   : > { %1515 = shalt.err (!%p1512_p12)
}
 0x257   : > { %1395 = dma.vmem_to_hbm [thread:$0]  (%p1689_p5), %s1227_s7, 128, %s1229_s8, %s1210_s26  }
 0x258 PF: > { %p1401_p13 = scmp.ge.s32.totalorder %s1598_s24, 2  ;;  %s1240_s17 = sand.u32 1, %s1562_s15  }
 0x259   : > { %s1241_s29 = scalar_lea.sflag [#allocation3], %s1240_s17 }
 0x25a   : > { %p1398_p0 = pnand %p1401_p13, %p1696_p7 }
 0x25c   : > { %p1399_p1 = pneg %p1398_p0 }
 0x25e   : > { %1557 = dma.done.wait (%p1399_p1), %s1241_s29, 128  }
 0x25f   : > { %1559 = vsyncadd (%p1399_p1), %s1241_s29, 4294967168  ;;  %s17_s24 = sadd.s32 1, %s1598_s24   ;;  %s2214_s12 = sld [smem:[#allocation5_spill]] }
 0x260   : > { %p14_p2 = scmp.ge.s32.totalorder %s17_s24, 20   ;;  %s2215_s17 = sld [smem:[#allocation12_spill]] }
 0x261   : > { %s2216_s18 = sld [smem:[#allocation6_spill]]  ;;  %s2222_s15 = smov %s1566_s16 }
 0x262   : > { %s2217_s19 = sld [smem:[#allocation7_spill]]  ;;  %16 = sbr.rel (!%p14_p2) target bundleno = 6 (0x6), region = 88 }
 0x263   : > { %s2218_s20 = sld [smem:[#allocation8_spill]] }
 0x264   : > { %s2219_s21 = sld [smem:[#allocation9_spill]] }
 0x265   : > { %s2220_s22 = sld [smem:[#allocation10_spill]]  ;;  %s2223_s16 = smov %s2214_s12 }
 0x266   : > { %s2221_s23 = sld [smem:[#allocation11_spill]] }
 0x267   :  { %1247 = vsyncpa [#allocation3], 1 }
 0x268   :  { %1249 = vsyncpa [#allocation3 + $0x1], 1 }

</bundles_post_ra>
